<compile_context>
chip_gen: v7x
topology: tpu7x:2x2x1
jax: 0.10.0
libtpu: 0.0.40
codegen_flags: <defaults>
</compile_context>

<pallas_src>
import functools

import jax
import jax.numpy as jnp
from jax import lax
from jax.experimental import pallas as pl
from jax.experimental.pallas import tpu as pltpu


def _round_up(x, m):
    return (x + m - 1) // m * m


def _lane_pad(n):
    return _round_up(max(int(n), 1), 128)


def _tpu_vmem_capacity():
    try:
        return int(pltpu.get_tpu_info().vmem_capacity_bytes)
    except Exception:
        return 128 * 1024 * 1024  # v5e/v6e physical VMEM


def _rib_loss_kernel(y_pred_ref, labels_ref, z_ref, w_ref, out_ref,
                     *, n_heads, batch_size):
    """Fused sufficiency + minimality partial CE sums for one batch tile.

    y_pred_ref : [TB, C]            f32          VMEM
    labels_ref : [TB, n_heads+1]    i32          VMEM (col 0 = labels[0], cols 1.. = batch_Ni)
    z_ref      : [TB, H+1]          f32/bf16     VMEM (last column is ones -> folds bias)
    w_ref      : [H+1, n_heads*C]   f32/bf16     VMEM (last row is the fused bias), single-buffered
    out_ref    : [2, 128]           f32          VMEM ([0,:]=suff CE sum, [1,:]=min CE sum)
    """
    tb, C = y_pred_ref.shape

    # --- hoisted constants shared by every CE term ---------------------------
    row_ids = pl.program_id(0) * tb + lax.broadcasted_iota(jnp.int32, (tb, 1), 0)
    row_mask = (row_ids < batch_size).astype(jnp.float32)       # mask batch padding
    cls = lax.broadcasted_iota(jnp.int32, (tb, C), 1)           # shared class iota

    def ce_sum(logits, label_col):
        # softmax cross-entropy with integer targets; SUM over valid rows
        m = jnp.max(logits, axis=-1, keepdims=True)
        s = jnp.sum(jnp.exp(logits - m), axis=-1, keepdims=True)
        onehot = (cls == label_col).astype(jnp.float32)
        picked = jnp.sum(onehot * logits, axis=-1, keepdims=True)
        # single masked reduce folding lse and picked-logit together
        return jnp.sum(row_mask * (m + jnp.log(s) - picked))

    # --- sufficiency: H(V_y | z) = CE(y_pred, labels[0]) ---------------------
    suff = ce_sum(y_pred_ref[...], labels_ref[:, 0:1])

    # TODO(synk): ScaleGrad is backward-only (grad *= -(-beta)); forward is identity,
    # so beta has no kernel-side effect here.

    # --- minimality: sum_i CE(decoder_i(z), batch_Ni[i]) ----------------------
    # one fused MXU push for all heads; bias is folded in via the ones column of z
    logits_all = jnp.dot(z_ref[...], w_ref[...], preferred_element_type=jnp.float32)

    mini = jnp.float32(0.0)
    # small static head count -> unrolled; static lane slices per head.
    # TODO(synk): for large n_heads/C switch to lax.fori_loop over heads so per-head
    # exp/onehot temporaries don't overlap live ranges (vreg spill risk).
    for i in range(n_heads):
        mini = mini + ce_sum(logits_all[:, i * C:(i + 1) * C],
                             labels_ref[:, i + 1:i + 2])

    # two direct sub-stores (no sublane concat through the XLU)
    out_ref[0:1, :] = jnp.broadcast_to(suff, (1, 128))
    out_ref[1:2, :] = jnp.broadcast_to(mini, (1, 128))


def rib_loss(y_pred, z_sample, labels, batch_Ni, beta, dec_w, dec_b,
             *, block_rows=None, mxu_bf16=False):
    """RIBLoss.forward. Returns (dib, H_V_nCz)."""
    del beta  # forward is the identity; beta only scales gradients in torch
    n_heads = int(dec_w.shape[0])
    B, C = y_pred.shape
    H = z_sample.shape[1]

    if n_heads == 0:
        # n_decoders == 0 branch of the torch module (sufficiency only).
        yp = y_pred.astype(jnp.float32)
        lse = jax.nn.logsumexp(yp, axis=-1)
        picked = jnp.take_along_axis(yp, labels[0][:, None].astype(jnp.int32), axis=-1)[:, 0]
        return jnp.mean(lse - picked), jnp.float32(0.0)

    nc = n_heads * C
    in_dtype = jnp.bfloat16 if mxu_bf16 else jnp.float32  # MXU operands; accumulation stays f32

    # --- VMEM budget (generation-aware) --------------------------------------
    vmem_cap = _tpu_vmem_capacity()
    vmem_limit = int(min(vmem_cap - (16 << 20), 96 << 20))     # 48 MiB on v7x, 96 MiB on v5e/v6e
    vmem_limit = max(vmem_limit, 32 << 20)

    op_bytes = 2 if mxu_bf16 else 4
    w_bytes = _round_up(H + 1, 8) * _lane_pad(nc) * op_bytes   # single-buffered weights
    per_row = (2 * _lane_pad(C) * 4                            # y_pred tile, double-buffered
               + 2 * _lane_pad(H + 1) * op_bytes               # z tile, double-buffered
               + 2 * _lane_pad(n_heads + 1) * 4                # labels tile (i32), double-buffered
               + 2 * _lane_pad(nc) * 4)                        # logits_all + CE temporaries (f32)
    max_rows = max(8, ((int(0.6 * vmem_limit) - w_bytes) // per_row) // 8 * 8)
    # TODO(synk): if n_heads*C is so large that even 8 rows don't fit, chunk the fused
    # matmul over head groups instead of relying on max_rows alone.

    # --- batch tiling (sublane aligned, step-overhead amortizing) -------------
    if block_rows is None:
        block_rows = min(2048, _round_up(B, 8))
        if _round_up(B, 8) >= 16:
            # keep >= 2 tiles so a second TensorCore (v7x megacore) always has work;
            # costs one extra ~0.35us step on single-TC v5e/v6e, negligible.
            block_rows = min(block_rows, _round_up(pl.cdiv(B, 2), 8))
    block_rows = max(8, _round_up(int(block_rows), 8))
    block_rows = min(block_rows, max_rows)
    b_pad = _round_up(B, block_rows)
    num_tiles = b_pad // block_rows

    # --- head-fused decoder params with bias folded as an extra K row --------
    # [n_heads,H,C] -> [H, n_heads*C]; bias row appended -> [H+1, n_heads*C]
    w_fused = jnp.transpose(dec_w, (1, 0, 2)).reshape(H, nc)
    w_aug = jnp.concatenate([w_fused, dec_b.reshape(1, nc)], axis=0).astype(in_dtype)

    # ones column on z pairs with the bias row (host-side, once)
    z_aug = jnp.concatenate(
        [z_sample, jnp.ones((B, 1), z_sample.dtype)], axis=1).astype(in_dtype)
    y_pred_f = y_pred.astype(jnp.float32)

    # labels[0] + batch_Ni merged into ONE batch-major i32 operand [B, n_heads+1]
    labels_all = jnp.concatenate(
        [labels[0][:, None].astype(jnp.int32), batch_Ni.astype(jnp.int32).T], axis=1)

    pad = b_pad - B
    if pad:
        # padded rows must stay zero-filled; the kernel masks them out of both CE sums
        y_pred_f = jnp.pad(y_pred_f, ((0, pad), (0, 0)))
        z_aug = jnp.pad(z_aug, ((0, pad), (0, 0)))
        labels_all = jnp.pad(labels_all, ((0, pad), (0, 0)))

    kernel = functools.partial(_rib_loss_kernel, n_heads=n_heads, batch_size=B)

    cost = pl.CostEstimate(
        flops=2 * b_pad * (H + 1) * nc + 6 * b_pad * C * (n_heads + 1),
        transcendentals=b_pad * (C + 1) * (n_heads + 1),
        bytes_accessed=(4 * y_pred_f.size + op_bytes * z_aug.size
                        + 4 * labels_all.size + op_bytes * w_aug.size
                        + 4 * num_tiles * 2 * 128),
    )

    out = pl.pallas_call(
        kernel,
        out_shape=jax.ShapeDtypeStruct((num_tiles, 2, 128), jnp.float32),
        grid_spec=pltpu.PrefetchScalarGridSpec(
            num_scalar_prefetch=0,
            grid=(num_tiles,),
            in_specs=[
                pl.BlockSpec((block_rows, C), lambda i: (i, 0)),
                pl.BlockSpec((block_rows, n_heads + 1), lambda i: (i, 0)),
                pl.BlockSpec((block_rows, H + 1), lambda i: (i, 0)),
                # grid-invariant fused weights: fetched once, single-buffered
                pl.BlockSpec((H + 1, nc), lambda i: (0, 0),
                             pipeline_mode=pl.Buffered(1)),
            ],
            out_specs=pl.BlockSpec((None, 2, 128), lambda i: (i, 0, 0)),
        ),
        compiler_params=pltpu.CompilerParams(
            dimension_semantics=("parallel",),   # batch tiles shard across v7x's 2 TCs
            vmem_limit_bytes=vmem_limit,
        ),
        cost_estimate=cost,
    )(y_pred_f, labels_all, z_aug, w_aug)

    inv_b = jnp.float32(1.0 / B)                 # GLOBAL batch size, not tile size
    h_suff = jnp.sum(out[:, 0, 0]) * inv_b
    h_min = jnp.sum(out[:, 1, 0]) * inv_b
    return h_suff + h_min, h_min


def _reference(y_pred, z_sample, labels, batch_Ni, dec_w, dec_b):
    def ce(logits, lab):
        lse = jax.nn.logsumexp(logits, axis=-1)
        picked = jnp.take_along_axis(logits, lab[:, None], axis=-1)[:, 0]
        return jnp.mean(lse - picked)

    h_suff = ce(y_pred, labels[0])
    h_min = jnp.float32(0.0)
    for i in range(dec_w.shape[0]):
        h_min = h_min + ce(z_sample @ dec_w[i] + dec_b[i], batch_Ni[i])
    return h_suff + h_min, h_min


if __name__ == "__main__":
    def make_inputs(key, B, H, C, n_heads):
        k1, k2, k3, k4, k5 = jax.random.split(key, 5)
        y_pred = jax.random.normal(k1, (B, C), jnp.float32)
        z_sample = jax.random.normal(k2, (B, H), jnp.float32)
        labels = jax.random.randint(k3, (1, B), 0, C, jnp.int32)
        batch_Ni = jax.random.randint(k4, (n_heads, B), 0, C, jnp.int32)
        dec_w = 0.1 * jax.random.normal(k5, (n_heads, H, C), jnp.float32)
        dec_b = 0.05 * jax.random.normal(k1, (n_heads, C), jnp.float32)
        return y_pred, z_sample, labels, batch_Ni, dec_w, dec_b

    beta = 1.0
    B, H, C, N_HEADS = 8, 32, 16, 2

    # --- config 1: small demo shapes (single tile, default tiling) -----------
    yp, zs, lb, ni, dw, db = make_inputs(jax.random.PRNGKey(0), B, H, C, N_HEADS)
    fn = jax.jit(functools.partial(rib_loss))
    dib, h_min = fn(yp, zs, lb, ni, beta, dw, db)
    jax.block_until_ready((dib, h_min))
    dib_ref, h_min_ref = _reference(yp, zs, lb, ni, dw, db)
    assert jnp.allclose(dib, dib_ref, rtol=1e-4, atol=1e-4), (dib, dib_ref)
    assert jnp.allclose(h_min, h_min_ref, rtol=1e-4, atol=1e-4), (h_min, h_min_ref)

    # --- config 2: non-multiple batch, DEFAULT tiling (auto >=2 tiles + pad) --
    B2 = 300
    yp2, zs2, lb2, ni2, dw2, db2 = make_inputs(jax.random.PRNGKey(1), B2, H, C, N_HEADS)
    dib2, h_min2 = fn(yp2, zs2, lb2, ni2, beta, dw2, db2)
    jax.block_until_ready((dib2, h_min2))
    dib2_ref, h_min2_ref = _reference(yp2, zs2, lb2, ni2, dw2, db2)
    assert jnp.allclose(dib2, dib2_ref, rtol=1e-4, atol=1e-4), (dib2, dib2_ref)
    assert jnp.allclose(h_min2, h_min2_ref, rtol=1e-4, atol=1e-4), (h_min2, h_min2_ref)

    # --- config 3: explicit small tiles, 3-tile grid with masked padding -----
    fn3 = jax.jit(functools.partial(rib_loss, block_rows=128))
    dib3, h_min3 = fn3(yp2, zs2, lb2, ni2, beta, dw2, db2)
    jax.block_until_ready((dib3, h_min3))
    assert jnp.allclose(dib3, dib2_ref, rtol=1e-4, atol=1e-4), (dib3, dib2_ref)
    assert jnp.allclose(h_min3, h_min2_ref, rtol=1e-4, atol=1e-4), (h_min3, h_min2_ref)

    print("KERNEL_OK")
</pallas_src>

<mosaic_0001>
module attributes {stable_mosaic.version = 11 : i64} {
  func.func @_rib_loss_kernel(%arg0: i32, %arg1: memref<8x16xf32, #tpu.memory_space<vmem>>, %arg2: memref<8x3xi32, #tpu.memory_space<vmem>>, %arg3: memref<8x33xf32, #tpu.memory_space<vmem>>, %arg4: memref<33x32xf32, #tpu.memory_space<vmem>>, %arg5: memref<1x2x128xf32, #tpu.memory_space<vmem>>) attributes {dimension_semantics = [#tpu.dimension_semantics<parallel>], iteration_bounds = array<i64: 1>, scalar_prefetch = 0 : i64, scratch_operands = 0 : i64, tpu.core_type = #tpu.core_type<tc>, window_params = [{transform_indices = @transform_0, window_bounds = array<i64: 8, 16>}, {transform_indices = @transform_1, window_bounds = array<i64: 8, 3>}, {transform_indices = @transform_2, window_bounds = array<i64: 8, 33>}, {pipeline_mode = #tpu.pipeline_mode<synchronous>, transform_indices = @transform_3, window_bounds = array<i64: 33, 32>}, {transform_indices = @transform_4, window_bounds = array<i64: 1, 2, 128>}]} {
    %c8_i32 = arith.constant 8 : i32
    %0 = arith.muli %arg0, %c8_i32 : i32
    %1 = tpu.iota {dimensions = array<i32: 0>} : vector<8x1xi32>
    %2 = vector.broadcast %0 : i32 to vector<8x1xi32>
    %3 = arith.addi %2, %1 : vector<8x1xi32>
    %c8_i32_0 = arith.constant 8 : i32
    %4 = vector.broadcast %c8_i32_0 : i32 to vector<8x1xi32>
    %5 = arith.cmpi slt, %3, %4 : vector<8x1xi32>
    %6 = arith.extui %5 : vector<8x1xi1> to vector<8x1xi32>
    %7 = arith.sitofp %6 : vector<8x1xi32> to vector<8x1xf32>
    %8 = tpu.iota {dimensions = array<i32: 1>} : vector<8x16xi32>
    %c0 = arith.constant 0 : index
    %c0_1 = arith.constant 0 : index
    %9 = vector.load %arg1[%c0, %c0_1] : memref<8x16xf32, #tpu.memory_space<vmem>>, vector<8x16xf32>
    %c0_2 = arith.constant 0 : index
    %c0_3 = arith.constant 0 : index
    %10 = vector.load %arg2[%c0_2, %c0_3] : memref<8x3xi32, #tpu.memory_space<vmem>>, vector<8x1xi32>
    %cst = arith.constant dense<0xFF800000> : vector<8xf32>
    %11 = vector.multi_reduction <maximumf>, %9, %cst [1] : vector<8x16xf32> to vector<8xf32>
    %12 = vector.shape_cast %11 : vector<8xf32> to vector<8x1xf32>
    %13 = vector.broadcast %12 : vector<8x1xf32> to vector<8x16xf32>
    %14 = arith.subf %9, %13 : vector<8x16xf32>
    %15 = math.exp %14 : vector<8x16xf32>
    %cst_4 = arith.constant dense<0.000000e+00> : vector<8xf32>
    %16 = vector.multi_reduction <add>, %15, %cst_4 [1] : vector<8x16xf32> to vector<8xf32>
    %17 = vector.shape_cast %16 : vector<8xf32> to vector<8x1xf32>
    %18 = vector.broadcast %10 : vector<8x1xi32> to vector<8x16xi32>
    %19 = arith.cmpi eq, %8, %18 : vector<8x16xi32>
    %20 = arith.extui %19 : vector<8x16xi1> to vector<8x16xi32>
    %21 = arith.sitofp %20 : vector<8x16xi32> to vector<8x16xf32>
    %22 = arith.mulf %21, %9 : vector<8x16xf32>
    %cst_5 = arith.constant dense<0.000000e+00> : vector<8xf32>
    %23 = vector.multi_reduction <add>, %22, %cst_5 [1] : vector<8x16xf32> to vector<8xf32>
    %24 = vector.shape_cast %23 : vector<8xf32> to vector<8x1xf32>
    %25 = math.log %17 : vector<8x1xf32>
    %26 = arith.addf %12, %25 : vector<8x1xf32>
    %27 = arith.subf %26, %24 : vector<8x1xf32>
    %28 = arith.mulf %7, %27 : vector<8x1xf32>
    %29 = vector.shape_cast %28 : vector<8x1xf32> to vector<1x8x1xf32>
    %cst_6 = arith.constant dense<0.000000e+00> : vector<1xf32>
    %30 = vector.multi_reduction <add>, %29, %cst_6 [1, 2] : vector<1x8x1xf32> to vector<1xf32>
    %31 = vector.shape_cast %30 : vector<1xf32> to vector<1x1x1xf32>
    %32 = vector.extract %31[0, 0, 0] : f32 from vector<1x1x1xf32>
    %c0_7 = arith.constant 0 : index
    %c0_8 = arith.constant 0 : index
    %33 = vector.load %arg3[%c0_7, %c0_8] : memref<8x33xf32, #tpu.memory_space<vmem>>, vector<8x33xf32>
    %c0_9 = arith.constant 0 : index
    %c0_10 = arith.constant 0 : index
    %34 = vector.load %arg4[%c0_9, %c0_10] : memref<33x32xf32, #tpu.memory_space<vmem>>, vector<33x32xf32>
    %cst_11 = arith.constant dense<0.000000e+00> : vector<8x32xf32>
    %35 = tpu.matmul %33, %34, %cst_11 {dimension_numbers = #tpu.dot_dimension_numbers<[1], [0], [0], [1], [0, 0, 1, 1], [], []>} : vector<8x33xf32>, vector<33x32xf32>, vector<8x32xf32> -> vector<8x32xf32>
    %36 = vector.extract_strided_slice %35 {offsets = [0, 0], sizes = [8, 16], strides = [1, 1]} : vector<8x32xf32> to vector<8x16xf32>
    %c0_12 = arith.constant 0 : index
    %c1 = arith.constant 1 : index
    %37 = vector.load %arg2[%c0_12, %c1] : memref<8x3xi32, #tpu.memory_space<vmem>>, vector<8x1xi32>
    %cst_13 = arith.constant dense<0xFF800000> : vector<8xf32>
    %38 = vector.multi_reduction <maximumf>, %36, %cst_13 [1] : vector<8x16xf32> to vector<8xf32>
    %39 = vector.shape_cast %38 : vector<8xf32> to vector<8x1xf32>
    %40 = vector.broadcast %39 : vector<8x1xf32> to vector<8x16xf32>
    %41 = arith.subf %36, %40 : vector<8x16xf32>
    %42 = math.exp %41 : vector<8x16xf32>
    %cst_14 = arith.constant dense<0.000000e+00> : vector<8xf32>
    %43 = vector.multi_reduction <add>, %42, %cst_14 [1] : vector<8x16xf32> to vector<8xf32>
    %44 = vector.shape_cast %43 : vector<8xf32> to vector<8x1xf32>
    %45 = vector.broadcast %37 : vector<8x1xi32> to vector<8x16xi32>
    %46 = arith.cmpi eq, %8, %45 : vector<8x16xi32>
    %47 = arith.extui %46 : vector<8x16xi1> to vector<8x16xi32>
    %48 = arith.sitofp %47 : vector<8x16xi32> to vector<8x16xf32>
    %49 = arith.mulf %48, %36 : vector<8x16xf32>
    %cst_15 = arith.constant dense<0.000000e+00> : vector<8xf32>
    %50 = vector.multi_reduction <add>, %49, %cst_15 [1] : vector<8x16xf32> to vector<8xf32>
    %51 = vector.shape_cast %50 : vector<8xf32> to vector<8x1xf32>
    %52 = math.log %44 : vector<8x1xf32>
    %53 = arith.addf %39, %52 : vector<8x1xf32>
    %54 = arith.subf %53, %51 : vector<8x1xf32>
    %55 = arith.mulf %7, %54 : vector<8x1xf32>
    %56 = vector.shape_cast %55 : vector<8x1xf32> to vector<1x8x1xf32>
    %cst_16 = arith.constant dense<0.000000e+00> : vector<1xf32>
    %57 = vector.multi_reduction <add>, %56, %cst_16 [1, 2] : vector<1x8x1xf32> to vector<1xf32>
    %58 = vector.shape_cast %57 : vector<1xf32> to vector<1x1x1xf32>
    %59 = vector.extract %58[0, 0, 0] : f32 from vector<1x1x1xf32>
    %cst_17 = arith.constant 0.000000e+00 : f32
    %60 = arith.addf %cst_17, %59 : f32
    %61 = vector.extract_strided_slice %35 {offsets = [0, 16], sizes = [8, 16], strides = [1, 1]} : vector<8x32xf32> to vector<8x16xf32>
    %c0_18 = arith.constant 0 : index
    %c2 = arith.constant 2 : index
    %62 = vector.load %arg2[%c0_18, %c2] : memref<8x3xi32, #tpu.memory_space<vmem>>, vector<8x1xi32>
    %cst_19 = arith.constant dense<0xFF800000> : vector<8xf32>
    %63 = vector.multi_reduction <maximumf>, %61, %cst_19 [1] : vector<8x16xf32> to vector<8xf32>
    %64 = vector.shape_cast %63 : vector<8xf32> to vector<8x1xf32>
    %65 = vector.broadcast %64 : vector<8x1xf32> to vector<8x16xf32>
    %66 = arith.subf %61, %65 : vector<8x16xf32>
    %67 = math.exp %66 : vector<8x16xf32>
    %cst_20 = arith.constant dense<0.000000e+00> : vector<8xf32>
    %68 = vector.multi_reduction <add>, %67, %cst_20 [1] : vector<8x16xf32> to vector<8xf32>
    %69 = vector.shape_cast %68 : vector<8xf32> to vector<8x1xf32>
    %70 = vector.broadcast %62 : vector<8x1xi32> to vector<8x16xi32>
    %71 = arith.cmpi eq, %8, %70 : vector<8x16xi32>
    %72 = arith.extui %71 : vector<8x16xi1> to vector<8x16xi32>
    %73 = arith.sitofp %72 : vector<8x16xi32> to vector<8x16xf32>
    %74 = arith.mulf %73, %61 : vector<8x16xf32>
    %cst_21 = arith.constant dense<0.000000e+00> : vector<8xf32>
    %75 = vector.multi_reduction <add>, %74, %cst_21 [1] : vector<8x16xf32> to vector<8xf32>
    %76 = vector.shape_cast %75 : vector<8xf32> to vector<8x1xf32>
    %77 = math.log %69 : vector<8x1xf32>
    %78 = arith.addf %64, %77 : vector<8x1xf32>
    %79 = arith.subf %78, %76 : vector<8x1xf32>
    %80 = arith.mulf %7, %79 : vector<8x1xf32>
    %81 = vector.shape_cast %80 : vector<8x1xf32> to vector<1x8x1xf32>
    %cst_22 = arith.constant dense<0.000000e+00> : vector<1xf32>
    %82 = vector.multi_reduction <add>, %81, %cst_22 [1, 2] : vector<1x8x1xf32> to vector<1xf32>
    %83 = vector.shape_cast %82 : vector<1xf32> to vector<1x1x1xf32>
    %84 = vector.extract %83[0, 0, 0] : f32 from vector<1x1x1xf32>
    %85 = arith.addf %60, %84 : f32
    %86 = vector.broadcast %32 : f32 to vector<1x128xf32>
    %c0_23 = arith.constant 0 : index
    %c0_24 = arith.constant 0 : index
    %c0_25 = arith.constant 0 : index
    %87 = vector.load %arg5[%c0_23, %c0_24, %c0_25] : memref<1x2x128xf32, #tpu.memory_space<vmem>>, vector<1x1x128xf32>
    %88 = vector.shape_cast %87 : vector<1x1x128xf32> to vector<1x128xf32>
    %89 = vector.shape_cast %86 : vector<1x128xf32> to vector<1x1x128xf32>
    tpu.vector_store %arg5[%c0_23, %c0_24, %c0_25], %89 {strides = array<i32>} : memref<1x2x128xf32, #tpu.memory_space<vmem>>, vector<1x1x128xf32>,
    %90 = vector.broadcast %85 : f32 to vector<1x128xf32>
    %c0_26 = arith.constant 0 : index
    %c1_27 = arith.constant 1 : index
    %c0_28 = arith.constant 0 : index
    %91 = vector.load %arg5[%c0_26, %c1_27, %c0_28] : memref<1x2x128xf32, #tpu.memory_space<vmem>>, vector<1x1x128xf32>
    %92 = vector.shape_cast %91 : vector<1x1x128xf32> to vector<1x128xf32>
    %93 = vector.shape_cast %90 : vector<1x128xf32> to vector<1x1x128xf32>
    tpu.vector_store %arg5[%c0_26, %c1_27, %c0_28], %93 {strides = array<i32>} : memref<1x2x128xf32, #tpu.memory_space<vmem>>, vector<1x1x128xf32>,
    return
  }
  func.func @transform_0(%arg0: i32) -> (i32, i32) {
    %c0_i32 = arith.constant 0 : i32
    %c0_i32_0 = arith.constant 0 : i32
    return %arg0, %c0_i32 : i32, i32
  }
  func.func @transform_1(%arg0: i32) -> (i32, i32) {
    %c0_i32 = arith.constant 0 : i32
    %c0_i32_0 = arith.constant 0 : i32
    return %arg0, %c0_i32 : i32, i32
  }
  func.func @transform_2(%arg0: i32) -> (i32, i32) {
    %c0_i32 = arith.constant 0 : i32
    %c0_i32_0 = arith.constant 0 : i32
    return %arg0, %c0_i32 : i32, i32
  }
  func.func @transform_3(%arg0: i32) -> (i32, i32) {
    %c0_i32 = arith.constant 0 : i32
    %c0_i32_0 = arith.constant 0 : i32
    %c0_i32_1 = arith.constant 0 : i32
    return %c0_i32, %c0_i32_0 : i32, i32
  }
  func.func @transform_4(%arg0: i32) -> (i32, i32, i32) {
    %c0_i32 = arith.constant 0 : i32
    %c0_i32_0 = arith.constant 0 : i32
    %c0_i32_1 = arith.constant 0 : i32
    return %arg0, %c0_i32, %c0_i32_0 : i32, i32, i32
  }
}

</mosaic_0001>

<bundles_post_ra>
// kernel: rib_loss.1
= control target key start
LH: loop header
LB: loop body
LE: loop exit
PB: predicated region body
PF: predicated region fallthrough
CT: control target
= control target key end

     0   :  { %9 = vsyncpa [#allocation3], 0  ;;  %s606_s0 = inlined_call_operand.hbm [shape: f32[8,16], index: 0, kind: input, shape index: {}]   ;;  %s607_s1 = inlined_call_operand.hbm [shape: s32[8,3], index: 1, kind: input, shape index: {}]   ;;  %s608_s2 = inlined_call_operand.hbm [shape: f32[8,33], index: 2, kind: input, shape index: {}]   ;;  %s609_s3 = inlined_call_operand.hbm [shape: f32[33,32], index: 3, kind: input, shape index: {}]   ;;  %s610_s4 = inlined_call_operand.hbm [shape: f32[1,2,128], index: 4, kind: output, shape index: {}]  }
   0x1   :  { %10 = vsyncpa [#allocation6], 0 }
   0x2   :  { %11 = vsyncpa [#allocation9], 0 }
   0x3   :  { %12 = vsyncpa [#allocation4], 0  ;;  %s483_s15 = smov [#allocation5]   ;;  %s484_s17 = smov [#allocation2]  }
   0x4   :  { %s29_s16 = sshll.u32 %s483_s15, 4  ;;  %s19_s18 = sshll.u32 %s484_s17, 4  ;;  %s30_s16 = int_to_ptr.vmem [resolvable:$true] %s29_s16  ;;  %s20_s18 = int_to_ptr.vmem [resolvable:$true] %s19_s18 }
   0x5   :  { %s365_s21 = scalar_lea.hbm %s607_s1, 128 }
   0x6   :  { %p366_p0 = scmp.ne.s32.totalorder %s607_s1, %s365_s21  ;;  %p369_p1 = scmp.lt.u32.totalorder %s365_s21, %s607_s1 }
   0x8   :  { %p371_p2 = pnand %p369_p1, %p366_p0 }
   0xa   :  { %374 = shalt.err (!%p371_p2)
}
   0xb   :  { %s375_s26 = scalar_lea.vmem %s30_s16, 128  ;;  %p380_p4 = scmp.lt.s32.totalorder %s30_s16, %s30_s16 }
   0xc   :  { %p376_p3 = scmp.ne.s32.totalorder %s30_s16, %s375_s26  ;;  %p381_p5 = scmp.lt.s32.totalorder %s375_s26, %s375_s26 }
   0xe   :  { %p382_p6 = por %p381_p5, %p380_p4 }
  0x10   :  { %p383_p7 = pnand %p382_p6, %p376_p3 }
  0x12   :  { %386 = shalt.err (!%p383_p7)
}
  0x13   :  { %32 = dma.hbm_to_vmem [thread:$0]  %s607_s1, 128, %s30_s16, [#allocation6]  }
  0x14   :  { %s387_s5 = scalar_lea.hbm %s606_s0, 128 }
  0x15   :  { %p388_p8 = scmp.ne.s32.totalorder %s606_s0, %s387_s5  ;;  %p391_p9 = scmp.lt.u32.totalorder %s387_s5, %s606_s0 }
  0x17   :  { %p393_p10 = pnand %p391_p9, %p388_p8 }
  0x19   :  { %396 = shalt.err (!%p393_p10)
}
  0x1a   :  { %s397_s10 = scalar_lea.vmem %s20_s18, 128  ;;  %p402_p12 = scmp.lt.s32.totalorder %s20_s18, %s20_s18 }
  0x1b   :  { %p398_p11 = scmp.ne.s32.totalorder %s20_s18, %s397_s10  ;;  %p403_p13 = scmp.lt.s32.totalorder %s397_s10, %s397_s10 }
  0x1d   :  { %p404_p0 = por %p403_p13, %p402_p12 }
  0x1f   :  { %p405_p1 = pnand %p404_p0, %p398_p11 }
  0x21   :  { %408 = shalt.err (!%p405_p1)
}
  0x22   :  { %22 = dma.hbm_to_vmem [thread:$0]  %s606_s0, 128, %s20_s18, [#allocation3]  }
  0x23   :  { %s485_s12 = smov [#allocation7]   ;;  %s486_s14 = smov [#allocation8]  }
  0x24   :  { %s39_s13 = sshll.u32 %s485_s12, 4  ;;  %s48_s15 = sshll.u32 %s486_s14, 4  ;;  %s40_s13 = int_to_ptr.vmem [resolvable:$true] %s39_s13  ;;  %s546_s15 = int_to_ptr.vmem [resolvable:$true] %s48_s15 }
  0x25   :  { %s409_s19 = scalar_lea.hbm %s608_s2, 128 }
  0x26   :  { %p410_p2 = scmp.ne.s32.totalorder %s608_s2, %s409_s19  ;;  %p413_p3 = scmp.lt.u32.totalorder %s409_s19, %s608_s2 }
  0x28   :  { %p415_p4 = pnand %p413_p3, %p410_p2 }
  0x2a   :  { %418 = shalt.err (!%p415_p4)
}
  0x2b   :  { %s419_s0 = scalar_lea.vmem %s40_s13, 128  ;;  %p424_p6 = scmp.lt.s32.totalorder %s40_s13, %s40_s13 }
  0x2c   :  { %p420_p5 = scmp.ne.s32.totalorder %s40_s13, %s419_s0  ;;  %p425_p7 = scmp.lt.s32.totalorder %s419_s0, %s419_s0 }
  0x2e   :  { %p426_p8 = por %p425_p7, %p424_p6 }
  0x30   :  { %p427_p9 = pnand %p426_p8, %p420_p5 }
  0x32   :  { %430 = shalt.err (!%p427_p9)
}
  0x33   :  { %42 = dma.hbm_to_vmem [thread:$0]  %s608_s2, 128, %s40_s13, [#allocation6]  }
  0x34   :  { %s431_s27 = scalar_lea.hbm %s609_s3, 640 }
  0x35   :  { %p432_p10 = scmp.ne.s32.totalorder %s609_s3, %s431_s27  ;;  %p435_p11 = scmp.lt.u32.totalorder %s431_s27, %s609_s3 }
  0x37   :  { %p437_p12 = pnand %p435_p11, %p432_p10 }
  0x39   :  { %440 = shalt.err (!%p437_p12)
}
  0x3a   :  { %s441_s6 = scalar_lea.vmem %s546_s15, 640  ;;  %p446_p0 = scmp.lt.s32.totalorder %s546_s15, %s546_s15 }
  0x3b   :  { %p442_p13 = scmp.ne.s32.totalorder %s546_s15, %s441_s6  ;;  %p447_p1 = scmp.lt.s32.totalorder %s441_s6, %s441_s6 }
  0x3d   :  { %p448_p2 = por %p447_p1, %p446_p0 }
  0x3f   :  { %p449_p3 = pnand %p448_p2, %p442_p13 }
  0x41   :  { %452 = shalt.err (!%p449_p3)
}
  0x42   :  { %s487_s2 = smov 128   ;;  %s488_s7 = smov 8  }
  0x43   :  { %54 = dma.hbm_to_vmem [thread:$0]  %s609_s3, 640, %s546_s15, [#allocation9], %s487_s2, %s487_s2, %s488_s7  }
  0x44   :  { %475 = dma.done.wait [#allocation3], 128  }
  0x45   :  { %476 = vsyncadd [#allocation3], 4294967168 }
  0x46   :  { %477 = dma.done.wait [#allocation6], 256  }
  0x47   :  { %478 = vsyncadd [#allocation6], 4294967040 }
  0x48   :  { %479 = dma.done.wait [#allocation9], 640  }
  0x49   :  { %480 = vsyncadd [#allocation9], 4294966656  ;;  %v489_v0 = vmov 0.0|0.0   ;;  %vm490_vm0 = vmmov 0   ;;  %v491_v1 = vmov 0.0   ;;  %v492_v2 = vmov 1  }
  0x4a   :  { %323 = vmatprep.subr.bf16.mxu0 %v489_v0  ;;  %320 = vmatprep.mubr.msk.f32.mxu0 %vm490_vm0, %v491_v1  ;;  %v116_v3 = vld [vmem:[#allocation8] sm:$0xff]  ;;  %v117_v4 = vld [vmem:[#allocation8 + $0x8] sm:$0xff]  ;;  %v118_v5 = vld [vmem:[#allocation8 + $0x10] sm:$0xff]  ;;  %vm125_vm1 = vcmask 1040384   ;;  %vm121_vm2 = vcmask 269312   ;;  %v493_v12 = vmov 0   ;;  %v75_v35 = vlaneseq }
  0x4b   :  { %350 = vset.pattern.permute.xlu1 %v492_v2  ;;  %v324_v6 = vpack.c.bf16 %v117_v4, %v116_v3  ;;  %v119_v7 = vld [vmem:[#allocation8 + $0x18] sm:$0xff]  ;;  %v78_v8 = vld [vmem:[#allocation5] sm:$0xff]  ;;  %v120_v10 = vld [vmem:[#allocation8 + $0x20] sm:$0x1]  ;;  %349 = vset.pattern.permute.xlu0 %v493_v12  ;;  %vm234_vm3 = vcmask 261248   ;;  %vm79_vm4 = vcmask 130048  }
  0x4c   :  { %v327_v9 = vpack.c.bf16 %v119_v7, %v118_v5  ;;  %209 = vperm.xlu1 %350, %v78_v8   ;;  %v115_v11 = vld [vmem:[#allocation7] sm:$0xff]  ;;  %v77_v14 = vld [vmem:[#allocation2] sm:$0xff]  ;;  %v494_v19 = vmov 2   ;;  %s495_s3 = smov 112   ;;  %v76_v37 = vand.u32 127, %v75_v35  ;;  %vm104_vm8 = vcmask 7168  }
  0x4d   :  { %325 = vmatpush3.bf16.msra.mxu0 %v324_v6  ;;  %v80_v18 = vsel %vm79_vm4, %v77_v14, -inf  ;;  %s496_s11 = smov [#allocation10]  }
  0x4e   :  { %326 = vmatprep.subr.bf16.mxu0 %v489_v0  ;;  %s288_s12 = sshll.u32 %s496_s11, 4  ;;  %s289_s12 = int_to_ptr.vmem [resolvable:$true] %s288_s12 }
  0x4f   :  { %s453_s15 = scalar_lea.vmem %s289_s12, 32  ;;  %p458_p5 = scmp.lt.s32.totalorder %s289_s12, %s289_s12 }
  0x50   :  { %351 = vset.pattern.permute.xlu1 %v494_v19  ;;  %p454_p4 = scmp.ne.s32.totalorder %s289_s12, %s453_s15  ;;  %p459_p6 = scmp.lt.s32.totalorder %s453_s15, %s453_s15 }
  0x51   :  { %328 = vmatpush3.bf16.msra.mxu0 %v327_v9 }
  0x52   :  { %318 = vmatprep.subr.mxu0 %v491_v1  ;;  %p460_p7 = por %p459_p6, %p458_p5 }
  0x54   :  { %p461_p8 = pnand %p460_p7, %p454_p4 }
  0x55   :  { %319 = vmatpush3.msk.msra.mxu0 %vm125_vm1, %v120_v10 }
  0x56   :  { %321 = vmatmul.mubr.msk.f32.vlgmr.msra.gmra.mrb[0].mxu0 %vm121_vm2, %v115_v11 }
  0xcb   :  { %v210_v20 = vpop.permute.xlu1 %209 }
  0xcc   :  { %vm211_vm6 = vcmp.eq.s32.totalorder %v76_v37, %v210_v20 }
  0xcd   :  { %v302_v42 = vsel %vm211_vm6, 1.0, %v491_v1 }
 0x129   :  { %v195_v13 = vpop.f32.mrb[0].mxu0 }
 0x12a   :  { %v322_v15 = vpop.f32.mrb[1].mxu0  ;;  %v235_v16 = vsel %vm234_vm3, %v195_v13, -inf  ;;  %v199_v17 = vsel %vm79_vm4, %v195_v13, -inf  ;;  %v214_v44 = vmul.f32 %v302_v42, %v195_v13 }
 0x12b   :  { %236 = vmax.xlane.f32.xlu0 %v235_v16  ;;  %200 = vmax.xlane.f32.xlu1 %v199_v17 }
 0x12c   :  { %v215_v45 = vsel %vm79_vm4, %v214_v44, 0.0 }
 0x12f   :  { %81 = vmax.xlane.f32.xlu0 %v80_v18 }
 0x145   :  { %90 = vperm.xlu0 %349, %v78_v8  }
 0x149   :  { %352 = vset.pattern.permute.xlu0 %v494_v19 }
 0x1b8   :  { %v581_v21 = vpop.xlane.xlu0 %236  ;;  %v201_v22 = vpop.xlane.xlu1 %200 }
 0x1b9   :  { %v238_v23 = vsub.f32 %v195_v13, %v581_v21  ;;  %v202_v24 = vsub.f32 %v195_v13, %v201_v22 }
 0x1bb   :  { %v239_v25 = vmul.f32 1.442695, %v238_v23  ;;  %v203_v26 = vmul.f32 1.442695, %v202_v24 }
 0x1bc   :  { %v82_v30 = vpop.xlane.xlu0 %81 }
 0x1bd   :  { %353 = vpow2.f32 %v239_v25  ;;  %v83_v31 = vsub.f32 %v77_v14, %v82_v30 }
 0x1be   :  { %355 = vpow2.f32 %v203_v26 }
 0x1bf   :  { %v84_v32 = vmul.f32 1.442695, %v83_v31 }
 0x1c1   :  { %357 = vpow2.f32 %v84_v32 }
 0x1c4   :  { %v91_v36 = vpop.permute.xlu0 %90 }
 0x1c5   :  { %vm92_vm5 = vcmp.eq.s32.totalorder %v76_v37, %v91_v36 }
 0x1c6   :  { %v299_v38 = vsel %vm92_vm5, 1.0, %v491_v1 }
 0x1c7   :  { %v354_v27 = vpop.eup %353  ;;  %v95_v39 = vmul.f32 %v299_v38, %v77_v14 }
 0x1c8   :  { %v356_v28 = vpop.eup %355  ;;  %242 = vrot.lane.b32.xlu1 %v354_v27, %s495_s3 }
 0x1c9   :  { %v205_v29 = vsel %vm79_vm4, %v356_v28, 0.0  ;;  %v96_v43 = vsel %vm79_vm4, %v95_v39, 0.0 }
 0x1ca   :  { %206 = vadd.xlane.f32.xlu0 %v205_v29 }
 0x1cb   :  { %v358_v33 = vpop.eup %357 }
 0x1cc   :  { %249 = vperm.xlu1 %351, %v78_v8   ;;  %v86_v34 = vsel %vm79_vm4, %v358_v33, 0.0 }
 0x1d0   :  { %255 = vrot.lane.b32.xlu1 %v195_v13, %s495_s3 }
 0x1f4   :  { %87 = vadd.xlane.f32.xlu1 %v86_v34 }
 0x23a   :  { %v243_v40 = vpop.permute.xlu1 %242 }
 0x23b   :  { %v245_v41 = vsel %vm79_vm4, %v243_v40, 0.0 }
 0x23c   :  { %246 = vadd.xlane.f32.xlu1 %v245_v41 }
 0x240   :  { %97 = vadd.xlane.f32.xlu1 %v96_v43 }
 0x244   :  { %216 = vadd.xlane.f32.xlu1 %v215_v45 }
 0x24b   :  { %v250_v46 = vpop.permute.xlu1 %249 }
 0x24c   :  { %vm251_vm7 = vcmp.eq.s32.totalorder %v76_v37, %v250_v46 }
 0x24d   :  { %v303_v47 = vsel %vm251_vm7, 1.0, %v491_v1 }
 0x24f   :  { %v256_v48 = vpop.permute.xlu1 %255 }
 0x250   :  { %v258_v49 = vmul.f32 %v303_v47, %v256_v48 }
 0x252   :  { %v259_v50 = vsel %vm79_vm4, %v258_v49, 0.0 }
 0x253   :  { %260 = vadd.xlane.f32.xlu1 %v259_v50 }
 0x257   :  { %v207_v52 = vpop.xlane.xlu0 %206 }
 0x281   :  { %v88_v51 = vpop.xlane.xlu1 %87 }
 0x282   :  { %359 = vlog2.f32 %v88_v51 }
 0x283   :  { %361 = vlog2.f32 %v207_v52 }
 0x28c   :  { %v360_v53 = vpop.eup %359 }
 0x28d   :  { %v100_v54 = vmul.f32 0.6931472, %v360_v53  ;;  %v362_v55 = vpop.eup %361 }
 0x28e   :  { %v219_v57 = vmul.f32 0.6931472, %v362_v55 }
 0x28f   :  { %v101_v58 = vadd.f32 %v100_v54, %v82_v30 }
 0x290   :  { %v220_v62 = vadd.f32 %v219_v57, %v201_v22 }
 0x2c9   :  { %v247_v56 = vpop.xlane.xlu1 %246 }
 0x2ca   :  { %363 = vlog2.f32 %v247_v56 }
 0x2cd   :  { %v98_v59 = vpop.xlane.xlu1 %97 }
 0x2ce   :  { %v102_v60 = vsub.f32 %v101_v58, %v98_v59 }
 0x2d0   :  { %v105_v61 = vsel %vm104_vm8, %v102_v60, 0.0 }
 0x2d1   :  { %106 = vadd.xlane.f32.xlu0 %v105_v61  ;;  %v217_v63 = vpop.xlane.xlu1 %216 }
 0x2d2   :  { %v221_v0 = vsub.f32 %v220_v62, %v217_v63 }
 0x2d4   :  { %v223_v1 = vsel %vm104_vm8, %v221_v0, 0.0  ;;  %v364_v2 = vpop.eup %363 }
 0x2d5   :  { %224 = vadd.xlane.f32.xlu1 %v223_v1  ;;  %v263_v3 = vmul.f32 0.6931472, %v364_v2 }
 0x2d7   :  { %v264_v4 = vadd.f32 %v263_v3, %v581_v21 }
 0x2e0   :  { %v261_v5 = vpop.xlane.xlu1 %260 }
 0x2e1   :  { %v265_v6 = vsub.f32 %v264_v4, %v261_v5 }
 0x2e3   :  { %v267_v7 = vsel %vm104_vm8, %v265_v6, 0.0 }
 0x2e4   :  { %268 = vadd.xlane.f32.xlu0 %v267_v7 }
 0x35e   :  { %v107_v8 = vpop.xlane.xlu0 %106 }
 0x35f   :  { %v108_v9 = vrot.slane %v107_v8, 4 }
 0x361   :  { %v109_v10 = vadd.f32 %v108_v9, %v107_v8 }
 0x362   :  { %v225_v11 = vpop.xlane.xlu1 %224 }
 0x363   :  { %v110_v12 = vrot.slane %v109_v10, 2  ;;  %v226_v13 = vrot.slane %v225_v11, 4 }
 0x365   :  { %v227_v14 = vadd.f32 %v226_v13, %v225_v11  ;;  %v111_v15 = vadd.f32 %v110_v12, %v109_v10 }
 0x367   :  { %v228_v16 = vrot.slane %v227_v14, 2  ;;  %v112_v17 = vrot.slane %v111_v15, 1 }
 0x369   :  { %v229_v18 = vadd.f32 %v228_v16, %v227_v14  ;;  %v113_v19 = vadd.f32 %v112_v17, %v111_v15 }
 0x36b   :  { %329 = vpush %v113_v19  ;;  %v230_v20 = vrot.slane %v229_v18, 1 }
 0x36d   :  { %v231_v22 = vadd.f32 %v230_v20, %v229_v18 }
 0x36f   :  { %331 = vpush %v231_v22 }
 0x371   :  { %v269_v21 = vpop.xlane.xlu0 %268 }
 0x372   :  { %v270_v23 = vrot.slane %v269_v21, 4 }
 0x374   :  { %v271_v24 = vadd.f32 %v270_v23, %v269_v21 }
 0x376   :  { %v272_v25 = vrot.slane %v271_v24, 2 }
 0x378   :  { %v273_v26 = vadd.f32 %v272_v25, %v271_v24 }
 0x37a   :  { %v274_v27 = vrot.slane %v273_v26, 1 }
 0x37c   :  { %v275_v28 = vadd.f32 %v274_v27, %v273_v26 }
 0x37e   :  { %333 = vpush %v275_v28 }
 0x39c   :  { %s330_s10 = spop %329 }
 0x39d   :  { %v278_v29 = vstv %s330_s10 }
 0x39e   :  { %279 = vst [vmem:[#allocation10] sm:$0x1] %v278_v29 }
 0x3a0   :  { %s332_s1 = spop %331 }
 0x3af   :  { %s334_s13 = spop %333 }
 0x3b0   :  { %s277_s14 = sadd.f32 %s334_s13, %s332_s1 }
 0x3b2   :  { %v280_v30 = vstv %s277_s14 }
 0x3b3   :  { %281 = vst [vmem:[#allocation10 + $0x1] sm:$0x1] %v280_v30 }
 0x3b4   :  { %464 = shalt.err (!%p461_p8)
}
 0x3b5   :  { %s465_s19 = scalar_lea.hbm %s610_s4, 32 }
 0x3b6   :  { %p466_p9 = scmp.ne.s32.totalorder %s610_s4, %s465_s19  ;;  %p469_p10 = scmp.lt.u32.totalorder %s465_s19, %s610_s4 }
 0x3b8   :  { %p471_p11 = pnand %p469_p10, %p466_p9 }
 0x3ba   :  { %474 = shalt.err (!%p471_p11)
}
 0x3bb   :  { %291 = dma.vmem_to_hbm [thread:$0]  %s289_s12, 32, %s610_s4, [#allocation4]  }
 0x3bc   :  { %481 = dma.done.wait [#allocation4], 32  }
 0x3bd   :  { %482 = vsyncadd [#allocation4], 4294967264 }
 0x3be   :  { %295 = vsyncpa [#allocation3], 1 }
 0x3bf   :  { %296 = vsyncpa [#allocation6], 1 }
 0x3c0   :  { %297 = vsyncpa [#allocation9], 1 }
 0x3c1   :  { %298 = vsyncpa [#allocation4], 1 }

</bundles_post_ra>
